<compile_context>
chip_gen: v6e
topology: v6e:2x2x1
jax: 0.10.0
libtpu: 0.0.40
codegen_flags: <defaults>
</compile_context>

<pallas_src>
import jax
import jax.numpy as jnp
from jax.experimental import pallas as pl
from jax.experimental.pallas import tpu as pltpu

_LANE = 128
_LANE_MAX = 2048                # preferred lane extent of the copy slab
_BLOCK_BYTES_CAP = 4 << 20      # ~4 MiB per block (x4 double-buffered in+out)
_VMEM_LIMIT = 32 << 20          # fits v5e/v6e/v7x physical VMEM with headroom


def _copy_kernel(x_ref, o_ref):
    # Reshape carries no arithmetic; the kernel is a pure lane-dense tile copy.
    o_ref[...] = x_ref[...]


def _round_up(a, m):
    return -(-a // m) * m


def _sublane_unit(itemsize):
    # Native second-minor tile: 8 for f32, 16 for bf16, 32 for int8/fp8.
    return max(8, 32 // itemsize)


def _pick_lane_extent(total):
    """Largest multiple of 128 that divides `total`, capped at _LANE_MAX.

    Returns 0 when `total` has no 128-multiple factor (fallback path).
    """
    if total % _LANE != 0:
        return 0
    l = min(total, _LANE_MAX)
    l -= l % _LANE
    while l >= _LANE:
        if total % l == 0:
            return l
        l -= _LANE
    return _LANE


def _resolve_shape(batch, total, shape):
    """torch.view-style shape resolution (at most one -1) for non-batch dims."""
    shape = list(shape)
    rest = total // batch
    neg = [i for i, s in enumerate(shape) if s == -1]
    if len(neg) > 1:
        raise ValueError("at most one -1 allowed in Reshape target shape")
    if neg:
        known = 1
        for i, s in enumerate(shape):
            if i != neg[0]:
                known *= s
        if known == 0 or rest % known != 0:
            raise ValueError(
                f"cannot view {total} elements as ({batch},)+{tuple(shape)}")
        shape[neg[0]] = rest // known
    prod = 1
    for s in shape:
        prod *= s
    if prod != rest:
        raise ValueError(
            f"cannot view {total} elements as ({batch},)+{tuple(shape)}")
    return tuple(shape)


def pallas_reshape(x, *shape):
    """Pallas-TPU equivalent of Reshape(*shape): x.view((x.size(0),) + shape)."""
    b = x.shape[0]
    total = int(x.size)
    tgt = _resolve_shape(b, total, shape)
    itemsize = jnp.dtype(x.dtype).itemsize
    sub = _sublane_unit(itemsize)

    # ---- choose the copy slab for lane density (independent of (B, K)) ----
    lane = _pick_lane_extent(total)
    if lane:
        rows = total // lane
    else:
        # No 128-multiple factor: single ragged row; tile the lane dim below.
        rows, lane = 1, total
    x2 = jnp.reshape(x, (rows, lane))  # metadata-only re-view of the input

    # ---- lane-dim tile (tk) ----
    if lane <= _LANE_MAX:
        tk = lane  # full lane extent in one block
    else:
        # Fallback slab with one huge row: the single sublane pads to the
        # native tile height, so budget VMEM per *padded* tile when capping tk.
        tk = max(_LANE, (_BLOCK_BYTES_CAP // (sub * itemsize)) // _LANE * _LANE)

    # ---- row-dim tile (tb), sublane-aligned, ~_BLOCK_BYTES_CAP per block ----
    if rows <= sub:
        tb = rows  # full extent: always a legal block dim
    else:
        rows_cap = max(sub, (_BLOCK_BYTES_CAP // (tk * itemsize)) // sub * sub)
        tb = min((rows // sub) * sub, rows_cap)
        # Guarantee >= 2 blocks along a parallel axis for megacore (v7x) when
        # the whole slab would otherwise fit in a single block.
        if pl.cdiv(rows, tb) == 1 and rows >= 2 * sub:
            tb = _round_up(pl.cdiv(rows, 2), sub)

    grid = (pl.cdiv(rows, tb), pl.cdiv(lane, tk))

    out2 = pl.pallas_call(
        _copy_kernel,
        out_shape=jax.ShapeDtypeStruct((rows, lane), x.dtype),
        grid=grid,
        in_specs=[pl.BlockSpec((tb, tk), lambda i, j: (i, j))],
        out_specs=pl.BlockSpec((tb, tk), lambda i, j: (i, j)),
        compiler_params=pltpu.CompilerParams(
            dimension_semantics=("parallel", "parallel"),
            vmem_limit_bytes=_VMEM_LIMIT,
        ),
        cost_estimate=pl.CostEstimate(
            flops=0, transcendentals=0, bytes_accessed=2 * total * itemsize),
    )(x2)

    # TODO(synk): torch .view aliases storage (zero-copy); Pallas necessarily
    # materializes a value-identical copy (2*nbytes HBM traffic the reference
    # op does not incur).  If the copy is not mandated, return
    # jnp.reshape(x, (b,) + tgt) directly.
    return jnp.reshape(out2, (b,) + tgt)


if __name__ == "__main__":
    key = jax.random.PRNGKey(0)
    B, C, H, W = 2, 4, 16, 16
    x = jax.random.normal(key, (B, C, H, W), jnp.float32)

    # Reshape(C * H * W): flatten each sample's features (typical use of
    # Reshape before a Linear head in traditional_feature_GNN.py).
    out = pallas_reshape(x, C * H * W)
    out = jax.block_until_ready(out)
    ref = jnp.reshape(x, (B, C * H * W))
    assert out.shape == (B, C * H * W), out.shape
    assert bool(jnp.array_equal(out, ref)), "Pallas reshape mismatch (flatten)"

    # Reshape(C, -1): multi-dim target with a -1 wildcard.
    out2 = pallas_reshape(x, C, -1)
    out2 = jax.block_until_ready(out2)
    ref2 = jnp.reshape(x, (B, C, H * W))
    assert out2.shape == (B, C, H * W), out2.shape
    assert bool(jnp.array_equal(out2, ref2)), "Pallas reshape mismatch (-1)"

    print("KERNEL_OK")
</pallas_src>

<mosaic_0001>
module attributes {stable_mosaic.version = 11 : i64} {
  func.func @_copy_kernel(%arg0: i32, %arg1: i32, %arg2: memref<1x2048xf32, #tpu.memory_space<vmem>>, %arg3: memref<1x2048xf32, #tpu.memory_space<vmem>>) attributes {dimension_semantics = [#tpu.dimension_semantics<parallel>, #tpu.dimension_semantics<parallel>], iteration_bounds = array<i64: 1, 1>, scalar_prefetch = 0 : i64, scratch_operands = 0 : i64, tpu.core_type = #tpu.core_type<tc>, window_params = [{transform_indices = @transform_0, window_bounds = array<i64: 1, 2048>}, {transform_indices = @transform_1, window_bounds = array<i64: 1, 2048>}]} {
    %c0 = arith.constant 0 : index
    %c0_0 = arith.constant 0 : index
    %0 = vector.load %arg2[%c0, %c0_0] : memref<1x2048xf32, #tpu.memory_space<vmem>>, vector<1x2048xf32>
    %c0_1 = arith.constant 0 : index
    %c0_2 = arith.constant 0 : index
    %1 = vector.load %arg3[%c0_1, %c0_2] : memref<1x2048xf32, #tpu.memory_space<vmem>>, vector<1x2048xf32>
    tpu.vector_store %arg3[%c0_1, %c0_2], %0 {strides = array<i32>} : memref<1x2048xf32, #tpu.memory_space<vmem>>, vector<1x2048xf32>,
    return
  }
  func.func @transform_0(%arg0: i32, %arg1: i32) -> (i32, i32) {
    %c0_i32 = arith.constant 0 : i32
    return %arg0, %arg1 : i32, i32
  }
  func.func @transform_1(%arg0: i32, %arg1: i32) -> (i32, i32) {
    %c0_i32 = arith.constant 0 : i32
    return %arg0, %arg1 : i32, i32
  }
}

</mosaic_0001>

<bundles_post_ra>
// kernel: tpu_custom_call.1
= control target key start
LH: loop header
LB: loop body
LE: loop exit
PB: predicated region body
PF: predicated region fallthrough
CT: control target
= control target key end

     0   :  { %6 = vsyncpa [#allocation3], 0  ;;  %s104_s0 = inlined_call_operand.hbm [shape: f32[1,2048], index: 0, kind: input, shape index: {}]   ;;  %s105_s1 = inlined_call_operand.hbm [shape: f32[1,2048], index: 1, kind: output, shape index: {}]  }
   0x1   :  { %7 = vsyncpa [#allocation4], 0  ;;  %s86_s6 = smov [#allocation2]  }
   0x2   :  { %s14_s7 = sshll.u32 %s86_s6, 4  ;;  %s15_s7 = int_to_ptr.vmem [resolvable:$true] %s14_s7 }
   0x3   :  { %s50_s8 = scalar_lea.vmem %s15_s7, 256  ;;  %p55_p1 = scmp.lt.s32.totalorder %s15_s7, %s15_s7 }
   0x4   :  { %p51_p0 = scmp.ne.s32.totalorder %s15_s7, %s50_s8  ;;  %p56_p2 = scmp.lt.s32.totalorder %s50_s8, %s50_s8 }
   0x6   :  { %p57_p3 = por %p56_p2, %p55_p1 }
   0x8   :  { %p58_p4 = pnand %p57_p3, %p51_p0 }
   0xa   :  { %61 = shalt.err (!%p58_p4)
}
   0xb   :  { %17 = dma.hbm_to_vmem [thread:$0]  %s104_s0, 256, %s15_s7, [#allocation3]  }
   0xc   :  { %82 = dma.done.wait [#allocation3], 256  }
   0xd   :  { %83 = vsyncadd [#allocation3], 4294967040  ;;  %s87_s11 = smov [#allocation5]   ;;  %v21_v0 = vld [vmem:[#allocation2] sm:$0xff]  ;;  %v22_v1 = vld [vmem:[#allocation2 + $0x8] sm:$0xff] }
   0xe   :  { %s31_s12 = sshll.u32 %s87_s11, 4  ;;  %23 = vst [vmem:[#allocation5] sm:$0xff] %v21_v0  ;;  %24 = vst [vmem:[#allocation5 + $0x8] sm:$0xff] %v22_v1  ;;  %s32_s12 = int_to_ptr.vmem [resolvable:$true] %s31_s12 }
   0xf   :  { %s62_s13 = scalar_lea.vmem %s32_s12, 256  ;;  %p67_p6 = scmp.lt.s32.totalorder %s32_s12, %s32_s12 }
  0x10   :  { %p63_p5 = scmp.ne.s32.totalorder %s32_s12, %s62_s13  ;;  %p68_p7 = scmp.lt.s32.totalorder %s62_s13, %s62_s13 }
  0x12   :  { %p69_p8 = por %p68_p7, %p67_p6 }
  0x14   :  { %p70_p9 = pnand %p69_p8, %p63_p5 }
  0x16   :  { %73 = shalt.err (!%p70_p9)
}
  0x17   :  { %34 = dma.vmem_to_hbm [thread:$0]  %s32_s12, 256, %s105_s1, [#allocation4]  }
  0x18   :  { %84 = dma.done.wait [#allocation4], 256  }
  0x19   :  { %85 = vsyncadd [#allocation4], 4294967040 }
  0x1a   :  { %38 = vsyncpa [#allocation3], 1 }
  0x1b   :  { %39 = vsyncpa [#allocation4], 1 }

</bundles_post_ra>
